<compile_context>
chip_gen: v5e
topology: v5e:2x2
jax: 0.10.0
libtpu: 0.0.40
codegen_flags: <defaults>
</compile_context>

<pallas_src>
from typing import NamedTuple

import jax
import jax.numpy as jnp
from jax.experimental import pallas as pl
from jax.experimental.pallas import tpu as pltpu

M_EXPERTS = 8
MAX_TILE_P = 1024                    # packed rows per grid step (~1.5 MiB f32 I/O)
VMEM_LIMIT_BYTES = 32 * 1024 * 1024  # plenty for ~6 MiB of live buffers, <= all chips


class RSNNParams(NamedTuple):
    # Raw per-expert params, laid out for x @ W (transpose of torch Linear.weight).
    w1: jax.Array   # (M, I, H)
    b1: jax.Array   # (M, 1, H)
    w2: jax.Array   # (M, H, O)
    b2: jax.Array   # (M, 1, O)
    # Lane-dense packed params: block-diagonal expansion by group G = 128 // O.
    w1p: jax.Array  # (M, G*I, G*H)
    b1p: jax.Array  # (M, 1,   G*H)
    w2p: jax.Array  # (M, G*H, G*O)
    b2p: jax.Array  # (M, 1,   G*O)


def _choose_group(n_in, n_hid, n_out):
    """Rows packed per lane-dense row so that G * n_out == 128 when possible."""
    if n_out >= 128 or 128 % n_out != 0:
        return 1
    g = 128 // n_out
    # Keep the block-diagonal expert weights comfortably VMEM-resident.
    packed_bytes = 4 * g * g * (n_in * n_hid + n_hid * n_out)
    return g if packed_bytes <= 8 * 1024 * 1024 else 1


def _round_up(x, mult):
    return ((x + mult - 1) // mult) * mult


def pack_params(w1, b1, w2, b2):
    """Build the block-diagonal (lane-dense) expert weights once."""
    m, n_in, n_hid = w1.shape
    n_out = w2.shape[2]
    g = _choose_group(n_in, n_hid, n_out)
    eye = jnp.eye(g, dtype=w1.dtype)
    # w1p[m, j*I + i, k*H + h] = (j == k) * w1[m, i, h]   (same for w2p)
    w1p = jnp.einsum("jk,mio->mjiko", eye, w1).reshape(m, g * n_in, g * n_hid)
    w2p = jnp.einsum("jk,mho->mjhko", eye, w2).reshape(m, g * n_hid, g * n_out)
    b1p = jnp.tile(b1, (1, 1, g))
    b2p = jnp.tile(b2, (1, 1, g))
    return RSNNParams(w1, b1, w2, b2, w1p, b1p, w2p, b2p)


def init_params(key, n_in, n_hid, n_out):
    """Deterministic init matching PyTorch Linear's uniform(-1/sqrt(fan_in)) range."""
    ks = jax.random.split(key, 4)
    bound1 = 1.0 / jnp.sqrt(n_in)
    bound2 = 1.0 / jnp.sqrt(n_hid)
    w1 = jax.random.uniform(ks[0], (M_EXPERTS, n_in, n_hid), jnp.float32, -bound1, bound1)
    b1 = jax.random.uniform(ks[1], (M_EXPERTS, 1, n_hid), jnp.float32, -bound1, bound1)
    w2 = jax.random.uniform(ks[2], (M_EXPERTS, n_hid, n_out), jnp.float32, -bound2, bound2)
    b2 = jax.random.uniform(ks[3], (M_EXPERTS, 1, n_out), jnp.float32, -bound2, bound2)
    return pack_params(w1, b1, w2, b2)


def _mlp_expert_kernel(m_ref, x_ref, w1_ref, b1_ref, w2_ref, b2_ref, o_ref):
    # x_ref: (TILE_P, G*I).  Selected expert's packed params (picked via index_map):
    #   w1_ref: (1, G*I, G*H)   b1_ref: (1, 1, G*H)
    #   w2_ref: (1, G*H, G*O)   b2_ref: (1, 1, G*O)
    x = x_ref[...]
    h = jnp.tanh(
        jnp.dot(x, w1_ref[0], preferred_element_type=jnp.float32) + b1_ref[0]
    )
    o_ref[...] = (
        jnp.dot(h, w2_ref[0], preferred_element_type=jnp.float32) + b2_ref[0]
    ).astype(o_ref.dtype)


def dynamic_rsnn_forward(s, m_idx, params, *, min_rows_for_pallas=512,
                         stream_bf16=False):
    """Pallas equivalent of dynamic_RSNN.forward(s, m)."""
    n_in, n_hid = params.w1.shape[1], params.w1.shape[2]
    n_out = params.w2.shape[2]
    n_experts = params.w1.shape[0]

    x = s.reshape(-1, n_in).astype(jnp.float32)
    n_rows = x.shape[0]

    # Range-check the expert index so a bad `m` can't drive an OOB weight DMA.
    m_arr = jnp.clip(jnp.asarray(m_idx, dtype=jnp.int32), 0, n_experts - 1).reshape(1)

    # Tiny batches: pallas_call launch + DMA setup dominates -> let XLA fuse it.
    if n_rows < min_rows_for_pallas:
        m = m_arr[0]
        h = jnp.tanh(x @ params.w1[m] + params.b1[m])
        return jnp.squeeze(h @ params.w2[m] + params.b2[m])

    g = _choose_group(n_in, n_hid, n_out)
    gi, gh, go = g * n_in, g * n_hid, g * n_out

    p = pl.cdiv(n_rows, g)              # packed rows needed
    if p <= MAX_TILE_P:
        tile_p = _round_up(p, 8)        # keep sublane dim a multiple of 8
        p_pad = tile_p                  # single full-array block
    else:
        tile_p = MAX_TILE_P
        p_pad = _round_up(p, tile_p)

    rows_pad = p_pad * g
    if rows_pad != n_rows:
        x = jnp.pad(x, ((0, rows_pad - n_rows), (0, 0)))
    if stream_bf16:
        # Optional: halves activation DMA traffic (accumulation stays f32),
        # but slightly changes numerics vs. the f32 PyTorch module. Off by default.
        x = x.astype(jnp.bfloat16)
    x_packed = x.reshape(p_pad, gi)     # contiguous reshape: 16 rows -> 1 packed row

    grid = (p_pad // tile_p,)

    cost = pl.CostEstimate(
        flops=2 * n_rows * (n_in * n_hid + n_hid * n_out),
        transcendentals=n_rows * n_hid,
        bytes_accessed=4 * (n_rows * (n_in + n_out) + gi * gh + gh * go + gh + go),
    )

    out_packed = pl.pallas_call(
        _mlp_expert_kernel,
        out_shape=jax.ShapeDtypeStruct((p_pad, go), jnp.float32),
        grid_spec=pltpu.PrefetchScalarGridSpec(
            num_scalar_prefetch=1,
            grid=grid,
            in_specs=[
                # activations stream tile-by-tile over the batch grid axis
                pl.BlockSpec((tile_p, gi), lambda i, m: (i, 0)),
                # expert params: block index independent of i -> DMA'd once, resident
                pl.BlockSpec((1, gi, gh), lambda i, m: (m[0], 0, 0)),
                pl.BlockSpec((1, 1, gh), lambda i, m: (m[0], 0, 0)),
                pl.BlockSpec((1, gh, go), lambda i, m: (m[0], 0, 0)),
                pl.BlockSpec((1, 1, go), lambda i, m: (m[0], 0, 0)),
            ],
            out_specs=pl.BlockSpec((tile_p, go), lambda i, m: (i, 0)),
        ),
        compiler_params=pltpu.CompilerParams(
            dimension_semantics=("parallel",),   # batch tiles -> both TCs on v7x
            vmem_limit_bytes=VMEM_LIMIT_BYTES,
        ),
        cost_estimate=cost,
    )(m_arr, x_packed, params.w1p, params.b1p, params.w2p, params.b2p)

    out = out_packed.reshape(p_pad * g, n_out)[:n_rows]
    # torch.squeeze removes all size-1 dims.
    return jnp.squeeze(out)


def _reference(s, m_idx, params):
    x = s.reshape(-1, params.w1.shape[1]).astype(jnp.float32)
    h = jnp.tanh(x @ params.w1[m_idx] + params.b1[m_idx])
    return jnp.squeeze(h @ params.w2[m_idx] + params.b2[m_idx])


if __name__ == "__main__":
    INPUT, HIDDEN, OUTPUT = 16, 32, 8

    key = jax.random.PRNGKey(0)
    k_param, k_x1, k_x2 = jax.random.split(key, 3)

    params = init_params(k_param, INPUT, HIDDEN, OUTPUT)

    # Case 1: small demo input (2, 4, 16, 16) -> 128 flattened rows.
    s_small = jax.random.normal(k_x1, (2, 4, 16, INPUT), dtype=jnp.float32)
    m_small = 3

    # 1a) default dispatch: tiny batch takes the fused-XLA fallback path.
    out_fb = jax.block_until_ready(dynamic_rsnn_forward(s_small, m_small, params))
    ref_small = _reference(s_small, m_small, params)
    assert out_fb.shape == ref_small.shape
    assert jnp.allclose(out_fb, ref_small, atol=1e-5, rtol=1e-5)

    # 1b) force the Pallas kernel on the same small input to exercise it.
    out_pk = jax.block_until_ready(
        dynamic_rsnn_forward(s_small, m_small, params, min_rows_for_pallas=0))
    assert out_pk.shape == ref_small.shape
    assert jnp.allclose(out_pk, ref_small, atol=1e-5, rtol=1e-5)

    # Case 2: larger batch (non-multiple of the tile) -> multi-step pipelined
    # grid with tail padding and resident expert weights.
    s_big = jax.random.normal(k_x2, (3, 7, 1111, INPUT), dtype=jnp.float32)  # 23331 rows
    m_big = 6
    out_big = jax.block_until_ready(dynamic_rsnn_forward(s_big, m_big, params))
    ref_big = _reference(s_big, m_big, params)
    assert out_big.shape == ref_big.shape
    assert jnp.allclose(out_big, ref_big, atol=1e-5, rtol=1e-5)

    print("KERNEL_OK")
</pallas_src>

<mosaic_0001>
module attributes {stable_mosaic.version = 11 : i64} {
  func.func @_mlp_expert_kernel(%arg0: i32, %arg1: memref<1xi32, #tpu.memory_space<smem>>, %arg2: memref<8x256xf32, #tpu.memory_space<vmem>>, %arg3: memref<1x256x512xf32, #tpu.memory_space<vmem>>, %arg4: memref<1x1x512xf32, #tpu.memory_space<vmem>>, %arg5: memref<1x512x128xf32, #tpu.memory_space<vmem>>, %arg6: memref<1x1x128xf32, #tpu.memory_space<vmem>>, %arg7: memref<8x128xf32, #tpu.memory_space<vmem>>) attributes {dimension_semantics = [#tpu.dimension_semantics<parallel>], iteration_bounds = array<i64: 1>, scalar_prefetch = 1 : i64, scratch_operands = 0 : i64, tpu.core_type = #tpu.core_type<tc>, window_params = [{transform_indices = @transform_0, window_bounds = array<i64: 8, 256>}, {transform_indices = @transform_1, window_bounds = array<i64: 1, 256, 512>}, {transform_indices = @transform_2, window_bounds = array<i64: 1, 1, 512>}, {transform_indices = @transform_3, window_bounds = array<i64: 1, 512, 128>}, {transform_indices = @transform_4, window_bounds = array<i64: 1, 1, 128>}, {transform_indices = @transform_5, window_bounds = array<i64: 8, 128>}]} {
    %c0 = arith.constant 0 : index
    %c0_0 = arith.constant 0 : index
    %0 = vector.load %arg2[%c0, %c0_0] : memref<8x256xf32, #tpu.memory_space<vmem>>, vector<8x256xf32>
    %c0_1 = arith.constant 0 : index
    %c0_2 = arith.constant 0 : index
    %c0_3 = arith.constant 0 : index
    %1 = vector.load %arg3[%c0_1, %c0_2, %c0_3] : memref<1x256x512xf32, #tpu.memory_space<vmem>>, vector<1x256x512xf32>
    %2 = vector.shape_cast %1 : vector<1x256x512xf32> to vector<256x512xf32>
    %cst = arith.constant dense<0.000000e+00> : vector<8x512xf32>
    %3 = tpu.matmul %0, %2, %cst {dimension_numbers = #tpu.dot_dimension_numbers<[1], [0], [0], [1], [0, 0, 1, 1], [], []>} : vector<8x256xf32>, vector<256x512xf32>, vector<8x512xf32> -> vector<8x512xf32>
    %c0_4 = arith.constant 0 : index
    %c0_5 = arith.constant 0 : index
    %c0_6 = arith.constant 0 : index
    %4 = vector.load %arg4[%c0_4, %c0_5, %c0_6] : memref<1x1x512xf32, #tpu.memory_space<vmem>>, vector<1x1x512xf32>
    %5 = vector.shape_cast %4 : vector<1x1x512xf32> to vector<1x512xf32>
    %6 = vector.broadcast %5 : vector<1x512xf32> to vector<8x512xf32>
    %7 = arith.addf %3, %6 : vector<8x512xf32>
    %8 = math.tanh %7 : vector<8x512xf32>
    %c0_7 = arith.constant 0 : index
    %c0_8 = arith.constant 0 : index
    %c0_9 = arith.constant 0 : index
    %9 = vector.load %arg5[%c0_7, %c0_8, %c0_9] : memref<1x512x128xf32, #tpu.memory_space<vmem>>, vector<1x512x128xf32>
    %10 = vector.shape_cast %9 : vector<1x512x128xf32> to vector<512x128xf32>
    %cst_10 = arith.constant dense<0.000000e+00> : vector<8x128xf32>
    %11 = tpu.matmul %8, %10, %cst_10 {dimension_numbers = #tpu.dot_dimension_numbers<[1], [0], [0], [1], [0, 0, 1, 1], [], []>} : vector<8x512xf32>, vector<512x128xf32>, vector<8x128xf32> -> vector<8x128xf32>
    %c0_11 = arith.constant 0 : index
    %c0_12 = arith.constant 0 : index
    %c0_13 = arith.constant 0 : index
    %12 = vector.load %arg6[%c0_11, %c0_12, %c0_13] : memref<1x1x128xf32, #tpu.memory_space<vmem>>, vector<1x1x128xf32>
    %13 = vector.shape_cast %12 : vector<1x1x128xf32> to vector<1x128xf32>
    %14 = vector.broadcast %13 : vector<1x128xf32> to vector<8x128xf32>
    %15 = arith.addf %11, %14 : vector<8x128xf32>
    %c0_14 = arith.constant 0 : index
    %c0_15 = arith.constant 0 : index
    %16 = vector.load %arg7[%c0_14, %c0_15] : memref<8x128xf32, #tpu.memory_space<vmem>>, vector<8x128xf32>
    tpu.vector_store %arg7[%c0_14, %c0_15], %15 {strides = array<i32>} : memref<8x128xf32, #tpu.memory_space<vmem>>, vector<8x128xf32>,
    return
  }
  func.func @transform_0(%arg0: i32, %arg1: memref<1xi32, #tpu.memory_space<smem>>) -> (i32, i32) {
    %c0_i32 = arith.constant 0 : i32
    %c0_i32_0 = arith.constant 0 : i32
    return %arg0, %c0_i32 : i32, i32
  }
  func.func @transform_1(%arg0: i32, %arg1: memref<1xi32, #tpu.memory_space<smem>>) -> (i32, i32, i32) {
    %c0 = arith.constant 0 : index
    %0 = memref.load %arg1[%c0] : memref<1xi32, #tpu.memory_space<smem>>
    %c0_i32 = arith.constant 0 : i32
    %c0_i32_0 = arith.constant 0 : i32
    %c0_i32_1 = arith.constant 0 : i32
    return %0, %c0_i32, %c0_i32_0 : i32, i32, i32
  }
  func.func @transform_2(%arg0: i32, %arg1: memref<1xi32, #tpu.memory_space<smem>>) -> (i32, i32, i32) {
    %c0 = arith.constant 0 : index
    %0 = memref.load %arg1[%c0] : memref<1xi32, #tpu.memory_space<smem>>
    %c0_i32 = arith.constant 0 : i32
    %c0_i32_0 = arith.constant 0 : i32
    %c0_i32_1 = arith.constant 0 : i32
    return %0, %c0_i32, %c0_i32_0 : i32, i32, i32
  }
  func.func @transform_3(%arg0: i32, %arg1: memref<1xi32, #tpu.memory_space<smem>>) -> (i32, i32, i32) {
    %c0 = arith.constant 0 : index
    %0 = memref.load %arg1[%c0] : memref<1xi32, #tpu.memory_space<smem>>
    %c0_i32 = arith.constant 0 : i32
    %c0_i32_0 = arith.constant 0 : i32
    %c0_i32_1 = arith.constant 0 : i32
    return %0, %c0_i32, %c0_i32_0 : i32, i32, i32
  }
  func.func @transform_4(%arg0: i32, %arg1: memref<1xi32, #tpu.memory_space<smem>>) -> (i32, i32, i32) {
    %c0 = arith.constant 0 : index
    %0 = memref.load %arg1[%c0] : memref<1xi32, #tpu.memory_space<smem>>
    %c0_i32 = arith.constant 0 : i32
    %c0_i32_0 = arith.constant 0 : i32
    %c0_i32_1 = arith.constant 0 : i32
    return %0, %c0_i32, %c0_i32_0 : i32, i32, i32
  }
  func.func @transform_5(%arg0: i32, %arg1: memref<1xi32, #tpu.memory_space<smem>>) -> (i32, i32) {
    %c0_i32 = arith.constant 0 : i32
    %c0_i32_0 = arith.constant 0 : i32
    return %arg0, %c0_i32 : i32, i32
  }
}

</mosaic_0001>

<bundles_post_ra>
// kernel: tpu_custom_call.1
= control target key start
LH: loop header
LB: loop body
LE: loop exit
PB: predicated region body
PF: predicated region fallthrough
CT: control target
= control target key end

     0   :  { %12 = vsyncpa [#allocation5], 0  ;;  %s868_s0 = inlined_call_operand.<no memory space> [shape: s32[1], index: 0, kind: input, shape index: {}]   ;;  %s869_s1 = inlined_call_operand.hbm [shape: f32[8,256], index: 1, kind: input, shape index: {}]   ;;  %s870_s2 = inlined_call_operand.hbm [shape: f32[8,256,512], index: 2, kind: input, shape index: {}]   ;;  %s871_s3 = inlined_call_operand.hbm [shape: f32[8,1,512], index: 3, kind: input, shape index: {}]   ;;  %s872_s4 = inlined_call_operand.hbm [shape: f32[8,512,128], index: 4, kind: input, shape index: {}]   ;;  %s873_s5 = inlined_call_operand.hbm [shape: f32[8,1,128], index: 5, kind: input, shape index: {}]   ;;  %s874_s6 = inlined_call_operand.hbm [shape: f32[8,128], index: 6, kind: output, shape index: {}]  }
   0x1   :  { %13 = vsyncpa [#allocation8], 0 }
   0x2   :  { %14 = vsyncpa [#allocation11], 0  ;;  %s596_s23 = sshll.u32 %s868_s0, 10 }
   0x3   :  { %15 = vsyncpa [#allocation6], 0  ;;  %s34_s26 = scalar_lea.hbm %s870_s2, %s596_s23  ;;  %s769_s27 = smov [#allocation7]  }
   0x4   :  { %s37_s28 = sshll.u32 %s769_s27, 4  ;;  %s35_s29 = sshll.u32 %s34_s26, 4  ;;  %s38_s28 = int_to_ptr.vmem [resolvable:$true] %s37_s28  ;;  %s36_s29 = int_to_ptr.hbm [resolvable:$true] %s35_s29 }
   0x5   :  { %s597_s8 = sshll.u32 %s868_s0, 9  ;;  %s617_s9 = sshra.s32 %s36_s29, 4  ;;  %s618_s9 = int_to_ptr.hbm [resolvable:$true] %s617_s9 }
   0x6   :  { %s619_s10 = scalar_lea.hbm %s618_s9, 1024  ;;  %s621_s13 = scalar_lea.hbm %s870_s2, 8192 }
   0x7   :  { %p620_p0 = scmp.ne.s32.totalorder %s618_s9, %s619_s10  ;;  %p622_p1 = scmp.lt.s32.totalorder %s618_s9, %s870_s2 }
   0x8   :  { %p623_p2 = scmp.lt.s32.totalorder %s621_s13, %s619_s10 }
   0xa   :  { %p624_p3 = por %p623_p2, %p622_p1 }
   0xc   :  { %p625_p4 = pnand %p624_p3, %p620_p0 }
   0xe   :  { %628 = shalt.err (!%p625_p4)
}
   0xf   :  { %s770_s16 = smov 512   ;;  %s771_s17 = smov 32  }
  0x10   :  { %43 = dma.hbm_to_vmem [thread:$0]  %s36_s29, 16384, %s38_s28, [#allocation8], %s770_s16, %s770_s16, %s771_s17  }
  0x11   :  { %s65_s20 = scalar_lea.hbm %s872_s4, %s597_s8  ;;  %s772_s22 = smov [#allocation10]  }
  0x12   :  { %s66_s21 = sshll.u32 %s65_s20, 4  ;;  %s68_s23 = sshll.u32 %s772_s22, 4  ;;  %s67_s21 = int_to_ptr.hbm [resolvable:$true] %s66_s21  ;;  %s69_s23 = int_to_ptr.vmem [resolvable:$true] %s68_s23 }
  0x13   :  { %s641_s24 = sshra.s32 %s67_s21, 4  ;;  %s645_s27 = scalar_lea.hbm %s872_s4, 4096  ;;  %s642_s24 = int_to_ptr.hbm [resolvable:$true] %s641_s24 }
  0x14   :  { %s643_s25 = scalar_lea.hbm %s642_s24, 512  ;;  %p646_p6 = scmp.lt.s32.totalorder %s642_s24, %s872_s4 }
  0x15   :  { %p644_p5 = scmp.ne.s32.totalorder %s642_s24, %s643_s25  ;;  %p647_p7 = scmp.lt.s32.totalorder %s645_s27, %s643_s25 }
  0x17   :  { %p648_p8 = por %p647_p7, %p646_p6 }
  0x19   :  { %p649_p9 = pnand %p648_p8, %p644_p5 }
  0x1b   :  { %652 = shalt.err (!%p649_p9)
}
  0x1c   :  { %s773_s28 = smov 128   ;;  %s774_s29 = smov 8  }
  0x1d   :  { %74 = dma.hbm_to_vmem [thread:$0]  %s67_s21, 8192, %s69_s23, [#allocation11], %s773_s28, %s773_s28, %s774_s29  }
  0x1e   :  { %s21_s10 = sshll.u32 %s869_s1, 4  ;;  %s775_s11 = smov [#allocation4]   ;;  %s22_s10 = int_to_ptr.hbm [resolvable:$true] %s21_s10 }
  0x1f   :  { %s23_s12 = sshll.u32 %s775_s11, 4  ;;  %s593_s15 = sshll.u32 %s868_s0, 2  ;;  %s24_s12 = int_to_ptr.vmem [resolvable:$true] %s23_s12 }
  0x20   :  { %26 = dma.hbm_to_vmem [thread:$0]  %s22_s10, 256, %s24_s12, [#allocation5]  }
  0x21   :  { %s50_s17 = scalar_lea.hbm %s871_s3, %s593_s15  ;;  %s776_s19 = smov [#allocation9]  }
  0x22   :  { %s52_s18 = sshll.u32 %s50_s17, 4  ;;  %s54_s20 = sshll.u32 %s776_s19, 4  ;;  %s53_s18 = int_to_ptr.hbm [resolvable:$true] %s52_s18  ;;  %s55_s20 = int_to_ptr.vmem [resolvable:$true] %s54_s20 }
  0x23   :  { %s689_s21 = sshra.s32 %s53_s18, 4  ;;  %s693_s24 = scalar_lea.hbm %s871_s3, 32  ;;  %s690_s21 = int_to_ptr.hbm [resolvable:$true] %s689_s21 }
  0x24   :  { %s691_s1 = scalar_lea.hbm %s690_s21, 4  ;;  %p694_p11 = scmp.lt.s32.totalorder %s690_s21, %s871_s3 }
  0x25   :  { %p692_p10 = scmp.ne.s32.totalorder %s690_s21, %s691_s1  ;;  %p695_p12 = scmp.lt.s32.totalorder %s693_s24, %s691_s1 }
  0x27   :  { %p696_p13 = por %p695_p12, %p694_p11 }
  0x29   :  { %p697_p0 = pnand %p696_p13, %p692_p10 }
  0x2b   :  { %700 = shalt.err (!%p697_p0)
}
  0x2c   :  { %57 = dma.hbm_to_vmem [thread:$0]  %s53_s18, 64, %s55_s20, [#allocation8]  }
  0x2d   :  { %s80_s28 = scalar_lea.hbm %s873_s5, %s868_s0  ;;  %s777_s8 = smov [#allocation12]  }
  0x2e   :  { %s82_s29 = sshll.u32 %s80_s28, 4  ;;  %s84_s9 = sshll.u32 %s777_s8, 4  ;;  %s83_s29 = int_to_ptr.hbm [resolvable:$true] %s82_s29  ;;  %s85_s9 = int_to_ptr.vmem [resolvable:$true] %s84_s9 }
  0x2f   :  { %s713_s10 = sshra.s32 %s83_s29, 4  ;;  %s717_s13 = scalar_lea.hbm %s873_s5, 8  ;;  %s714_s10 = int_to_ptr.hbm [resolvable:$true] %s713_s10 }
  0x30   :  { %s715_s3 = scalar_lea.hbm %s714_s10, 1  ;;  %p718_p2 = scmp.lt.s32.totalorder %s714_s10, %s873_s5 }
  0x31   :  { %p716_p1 = scmp.ne.s32.totalorder %s714_s10, %s715_s3  ;;  %p719_p3 = scmp.lt.s32.totalorder %s717_s13, %s715_s3 }
  0x33   :  { %p720_p4 = por %p719_p3, %p718_p2 }
  0x35   :  { %p721_p5 = pnand %p720_p4, %p716_p1 }
  0x37   :  { %724 = shalt.err (!%p721_p5)
}
  0x38   :  { %87 = dma.hbm_to_vmem [thread:$0]  %s83_s29, 16, %s85_s9, [#allocation11]  }
  0x39   :  { %761 = dma.done.wait [#allocation5], 256  }
  0x3a   :  { %762 = vsyncadd [#allocation5], 4294967040 }
  0x3b   :  { %763 = dma.done.wait [#allocation8], 16448  }
  0x3c   :  { %764 = vsyncadd [#allocation8], 4294950848 }
  0x3d   :  { %765 = dma.done.wait [#allocation11], 8208  }
  0x3e   :  { %766 = vsyncadd [#allocation11], 4294959088  ;;  %v174_v0 = vld [vmem:[#allocation7 + $0x1e0] sm:$0xff]  ;;  %v175_v1 = vld [vmem:[#allocation7 + $0x1e8] sm:$0xff]  ;;  %s778_s0 = smov [#allocation13]   ;;  %s572_s17 = sshll.u32 %s874_s6, 4  ;;  %s573_s17 = int_to_ptr.hbm [resolvable:$true] %s572_s17 }
  0x3f   :  { %v170_v2 = vld [vmem:[#allocation7 + $0x1c0] sm:$0xff]  ;;  %252 = vmatpush.msra.mxu0 %v174_v0  ;;  %292 = vmatpush.msra.mxu2 %v175_v1  ;;  %v171_v4 = vld [vmem:[#allocation7 + $0x1c8] sm:$0xff]  ;;  %v176_v62 = vld [vmem:[#allocation7 + $0x1f0] sm:$0xff]  ;;  %s570_s5 = sshll.u32 %s778_s0, 4  ;;  %s571_s5 = int_to_ptr.vmem [resolvable:$true] %s570_s5 }
  0x40   :  { %v238_v3 = vld [vmem:[#allocation7 + $0x3e0] sm:$0xff]  ;;  %v239_v5 = vld [vmem:[#allocation7 + $0x3e8] sm:$0xff]  ;;  %v177_v63 = vld [vmem:[#allocation7 + $0x1f8] sm:$0xff] }
  0x41   :  { %272 = vmatpush.msra.mxu1 %v238_v3  ;;  %312 = vmatpush.msra.mxu3 %v239_v5  ;;  %v166_v6 = vld [vmem:[#allocation7 + $0x1a0] sm:$0xff]  ;;  %v167_v8 = vld [vmem:[#allocation7 + $0x1a8] sm:$0xff]  ;;  %v240_v3 = vld [vmem:[#allocation7 + $0x3f0] sm:$0xff] }
  0x42   :  { %v234_v7 = vld [vmem:[#allocation7 + $0x3c0] sm:$0xff]  ;;  %253 = vmatpush.msra.mxu0 %v170_v2  ;;  %293 = vmatpush.msra.mxu2 %v171_v4  ;;  %v235_v9 = vld [vmem:[#allocation7 + $0x3c8] sm:$0xff]  ;;  %v172_v2 = vld [vmem:[#allocation7 + $0x1d0] sm:$0xff] }
  0x43   :  { %v230_v10 = vld [vmem:[#allocation7 + $0x3a0] sm:$0xff]  ;;  %273 = vmatpush.msra.mxu1 %v234_v7  ;;  %313 = vmatpush.msra.mxu3 %v235_v9  ;;  %v163_v12 = vld [vmem:[#allocation7 + $0x188] sm:$0xff]  ;;  %v173_v4 = vld [vmem:[#allocation7 + $0x1d8] sm:$0xff] }
  0x44   :  { %v162_v11 = vld [vmem:[#allocation7 + $0x180] sm:$0xff]  ;;  %v231_v13 = vld [vmem:[#allocation7 + $0x3a8] sm:$0xff]  ;;  %254 = vmatpush.msra.mxu0 %v166_v6  ;;  %294 = vmatpush.msra.mxu2 %v167_v8  ;;  %v241_v5 = vld [vmem:[#allocation7 + $0x3f8] sm:$0xff] }
  0x45   :  { %v226_v14 = vld [vmem:[#allocation7 + $0x380] sm:$0xff]  ;;  %v227_v15 = vld [vmem:[#allocation7 + $0x388] sm:$0xff]  ;;  %274 = vmatpush.msra.mxu1 %v230_v10  ;;  %314 = vmatpush.msra.mxu3 %v231_v13  ;;  %v168_v6 = vld [vmem:[#allocation7 + $0x1b0] sm:$0xff] }
  0x46   :  { %v158_v16 = vld [vmem:[#allocation7 + $0x160] sm:$0xff]  ;;  %v159_v17 = vld [vmem:[#allocation7 + $0x168] sm:$0xff]  ;;  %255 = vmatpush.msra.mxu0 %v162_v11  ;;  %295 = vmatpush.msra.mxu2 %v163_v12  ;;  %v236_v7 = vld [vmem:[#allocation7 + $0x3d0] sm:$0xff] }
  0x47   :  { %v222_v18 = vld [vmem:[#allocation7 + $0x360] sm:$0xff]  ;;  %v223_v19 = vld [vmem:[#allocation7 + $0x368] sm:$0xff]  ;;  %275 = vmatpush.msra.mxu1 %v226_v14  ;;  %315 = vmatpush.msra.mxu3 %v227_v15  ;;  %v169_v8 = vld [vmem:[#allocation7 + $0x1b8] sm:$0xff] }
  0x48   :  { %v154_v20 = vld [vmem:[#allocation7 + $0x140] sm:$0xff]  ;;  %v155_v21 = vld [vmem:[#allocation7 + $0x148] sm:$0xff]  ;;  %256 = vmatpush.msra.mxu0 %v158_v16  ;;  %296 = vmatpush.msra.mxu2 %v159_v17  ;;  %v237_v9 = vld [vmem:[#allocation7 + $0x3d8] sm:$0xff] }
  0x49   :  { %v218_v22 = vld [vmem:[#allocation7 + $0x340] sm:$0xff]  ;;  %v219_v23 = vld [vmem:[#allocation7 + $0x348] sm:$0xff]  ;;  %276 = vmatpush.msra.mxu1 %v222_v18  ;;  %316 = vmatpush.msra.mxu3 %v223_v19  ;;  %v164_v10 = vld [vmem:[#allocation7 + $0x190] sm:$0xff] }
  0x4a   :  { %v150_v24 = vld [vmem:[#allocation7 + $0x120] sm:$0xff]  ;;  %v151_v25 = vld [vmem:[#allocation7 + $0x128] sm:$0xff]  ;;  %257 = vmatpush.msra.mxu0 %v154_v20  ;;  %297 = vmatpush.msra.mxu2 %v155_v21  ;;  %v232_v11 = vld [vmem:[#allocation7 + $0x3b0] sm:$0xff] }
  0x4b   :  { %v214_v26 = vld [vmem:[#allocation7 + $0x320] sm:$0xff]  ;;  %v215_v27 = vld [vmem:[#allocation7 + $0x328] sm:$0xff]  ;;  %277 = vmatpush.msra.mxu1 %v218_v22  ;;  %317 = vmatpush.msra.mxu3 %v219_v23  ;;  %v165_v12 = vld [vmem:[#allocation7 + $0x198] sm:$0xff] }
  0x4c   :  { %v146_v28 = vld [vmem:[#allocation7 + $0x100] sm:$0xff]  ;;  %v147_v29 = vld [vmem:[#allocation7 + $0x108] sm:$0xff]  ;;  %258 = vmatpush.msra.mxu0 %v150_v24  ;;  %298 = vmatpush.msra.mxu2 %v151_v25  ;;  %v233_v13 = vld [vmem:[#allocation7 + $0x3b8] sm:$0xff] }
  0x4d   :  { %v210_v30 = vld [vmem:[#allocation7 + $0x300] sm:$0xff]  ;;  %v211_v31 = vld [vmem:[#allocation7 + $0x308] sm:$0xff]  ;;  %278 = vmatpush.msra.mxu1 %v214_v26  ;;  %318 = vmatpush.msra.mxu3 %v215_v27  ;;  %v160_v14 = vld [vmem:[#allocation7 + $0x170] sm:$0xff] }
  0x4e   :  { %v142_v32 = vld [vmem:[#allocation7 + $0xe0] sm:$0xff]  ;;  %v143_v33 = vld [vmem:[#allocation7 + $0xe8] sm:$0xff]  ;;  %259 = vmatpush.msra.mxu0 %v146_v28  ;;  %299 = vmatpush.msra.mxu2 %v147_v29  ;;  %v228_v15 = vld [vmem:[#allocation7 + $0x390] sm:$0xff] }
  0x4f   :  { %v206_v34 = vld [vmem:[#allocation7 + $0x2e0] sm:$0xff]  ;;  %v207_v35 = vld [vmem:[#allocation7 + $0x2e8] sm:$0xff]  ;;  %279 = vmatpush.msra.mxu1 %v210_v30  ;;  %319 = vmatpush.msra.mxu3 %v211_v31  ;;  %v161_v16 = vld [vmem:[#allocation7 + $0x178] sm:$0xff] }
  0x50   :  { %v138_v36 = vld [vmem:[#allocation7 + $0xc0] sm:$0xff]  ;;  %v139_v37 = vld [vmem:[#allocation7 + $0xc8] sm:$0xff]  ;;  %260 = vmatpush.msra.mxu0 %v142_v32  ;;  %300 = vmatpush.msra.mxu2 %v143_v33  ;;  %v229_v17 = vld [vmem:[#allocation7 + $0x398] sm:$0xff] }
  0x51   :  { %v202_v38 = vld [vmem:[#allocation7 + $0x2c0] sm:$0xff]  ;;  %v203_v39 = vld [vmem:[#allocation7 + $0x2c8] sm:$0xff]  ;;  %280 = vmatpush.msra.mxu1 %v206_v34  ;;  %320 = vmatpush.msra.mxu3 %v207_v35  ;;  %v156_v18 = vld [vmem:[#allocation7 + $0x150] sm:$0xff] }
  0x52   :  { %v134_v40 = vld [vmem:[#allocation7 + $0xa0] sm:$0xff]  ;;  %v135_v41 = vld [vmem:[#allocation7 + $0xa8] sm:$0xff]  ;;  %261 = vmatpush.msra.mxu0 %v138_v36  ;;  %301 = vmatpush.msra.mxu2 %v139_v37  ;;  %v224_v19 = vld [vmem:[#allocation7 + $0x370] sm:$0xff] }
  0x53   :  { %v198_v42 = vld [vmem:[#allocation7 + $0x2a0] sm:$0xff]  ;;  %v199_v43 = vld [vmem:[#allocation7 + $0x2a8] sm:$0xff]  ;;  %281 = vmatpush.msra.mxu1 %v202_v38  ;;  %321 = vmatpush.msra.mxu3 %v203_v39  ;;  %v157_v20 = vld [vmem:[#allocation7 + $0x158] sm:$0xff] }
  0x54   :  { %v130_v44 = vld [vmem:[#allocation7 + $0x80] sm:$0xff]  ;;  %v131_v45 = vld [vmem:[#allocation7 + $0x88] sm:$0xff]  ;;  %262 = vmatpush.msra.mxu0 %v134_v40  ;;  %302 = vmatpush.msra.mxu2 %v135_v41  ;;  %v225_v21 = vld [vmem:[#allocation7 + $0x378] sm:$0xff] }
  0x55   :  { %v194_v46 = vld [vmem:[#allocation7 + $0x280] sm:$0xff]  ;;  %v195_v47 = vld [vmem:[#allocation7 + $0x288] sm:$0xff]  ;;  %282 = vmatpush.msra.mxu1 %v198_v42  ;;  %322 = vmatpush.msra.mxu3 %v199_v43  ;;  %v152_v22 = vld [vmem:[#allocation7 + $0x130] sm:$0xff] }
  0x56   :  { %v126_v48 = vld [vmem:[#allocation7 + $0x60] sm:$0xff]  ;;  %v127_v49 = vld [vmem:[#allocation7 + $0x68] sm:$0xff]  ;;  %263 = vmatpush.msra.mxu0 %v130_v44  ;;  %303 = vmatpush.msra.mxu2 %v131_v45  ;;  %v220_v23 = vld [vmem:[#allocation7 + $0x350] sm:$0xff] }
  0x57   :  { %v190_v50 = vld [vmem:[#allocation7 + $0x260] sm:$0xff]  ;;  %v191_v51 = vld [vmem:[#allocation7 + $0x268] sm:$0xff]  ;;  %283 = vmatpush.msra.mxu1 %v194_v46  ;;  %323 = vmatpush.msra.mxu3 %v195_v47  ;;  %v153_v24 = vld [vmem:[#allocation7 + $0x138] sm:$0xff] }
  0x58   :  { %v122_v52 = vld [vmem:[#allocation7 + $0x40] sm:$0xff]  ;;  %v123_v53 = vld [vmem:[#allocation7 + $0x48] sm:$0xff]  ;;  %264 = vmatpush.msra.mxu0 %v126_v48  ;;  %304 = vmatpush.msra.mxu2 %v127_v49  ;;  %v221_v25 = vld [vmem:[#allocation7 + $0x358] sm:$0xff] }
  0x59   :  { %v186_v54 = vld [vmem:[#allocation7 + $0x240] sm:$0xff]  ;;  %v187_v55 = vld [vmem:[#allocation7 + $0x248] sm:$0xff]  ;;  %284 = vmatpush.msra.mxu1 %v190_v50  ;;  %324 = vmatpush.msra.mxu3 %v191_v51  ;;  %v148_v26 = vld [vmem:[#allocation7 + $0x110] sm:$0xff] }
  0x5a   :  { %v118_v56 = vld [vmem:[#allocation7 + $0x20] sm:$0xff]  ;;  %v119_v57 = vld [vmem:[#allocation7 + $0x28] sm:$0xff]  ;;  %265 = vmatpush.msra.mxu0 %v122_v52  ;;  %305 = vmatpush.msra.mxu2 %v123_v53  ;;  %v216_v27 = vld [vmem:[#allocation7 + $0x330] sm:$0xff] }
  0x5b   :  { %v182_v58 = vld [vmem:[#allocation7 + $0x220] sm:$0xff]  ;;  %v183_v59 = vld [vmem:[#allocation7 + $0x228] sm:$0xff]  ;;  %285 = vmatpush.msra.mxu1 %v186_v54  ;;  %325 = vmatpush.msra.mxu3 %v187_v55  ;;  %v149_v28 = vld [vmem:[#allocation7 + $0x118] sm:$0xff] }
  0x5c   :  { %v114_v60 = vld [vmem:[#allocation7] sm:$0xff]  ;;  %v115_v61 = vld [vmem:[#allocation7 + $0x8] sm:$0xff]  ;;  %266 = vmatpush.msra.mxu0 %v118_v56  ;;  %306 = vmatpush.msra.mxu2 %v119_v57  ;;  %v217_v29 = vld [vmem:[#allocation7 + $0x338] sm:$0xff] }
  0x5d   :  { %286 = vmatpush.msra.mxu1 %v182_v58  ;;  %326 = vmatpush.msra.mxu3 %v183_v59  ;;  %v178_v0 = vld [vmem:[#allocation7 + $0x200] sm:$0xff]  ;;  %v179_v1 = vld [vmem:[#allocation7 + $0x208] sm:$0xff]  ;;  %v144_v30 = vld [vmem:[#allocation7 + $0xf0] sm:$0xff] }
  0x5e   :  { %267 = vmatpush.msra.mxu0 %v114_v60  ;;  %307 = vmatpush.msra.mxu2 %v115_v61  ;;  %v212_v31 = vld [vmem:[#allocation7 + $0x310] sm:$0xff]  ;;  %v145_v32 = vld [vmem:[#allocation7 + $0xf8] sm:$0xff] }
  0x5f   :  { %287 = vmatpush.msra.mxu1 %v178_v0  ;;  %327 = vmatpush.msra.mxu3 %v179_v1  ;;  %v213_v33 = vld [vmem:[#allocation7 + $0x318] sm:$0xff]  ;;  %v140_v34 = vld [vmem:[#allocation7 + $0xd0] sm:$0xff] }
  0x60   :  { %332 = vmatpush.msrb.mxu0 %v176_v62  ;;  %372 = vmatpush.msrb.mxu2 %v177_v63  ;;  %v208_v35 = vld [vmem:[#allocation7 + $0x2f0] sm:$0xff]  ;;  %v141_v36 = vld [vmem:[#allocation7 + $0xd8] sm:$0xff] }
  0x61   :  { %352 = vmatpush.msrb.mxu1 %v240_v3  ;;  %392 = vmatpush.msrb.mxu3 %v241_v5  ;;  %v209_v37 = vld [vmem:[#allocation7 + $0x2f8] sm:$0xff]  ;;  %v136_v38 = vld [vmem:[#allocation7 + $0xb0] sm:$0xff] }
  0x62   :  { %333 = vmatpush.msrb.mxu0 %v172_v2  ;;  %373 = vmatpush.msrb.mxu2 %v173_v4  ;;  %v204_v39 = vld [vmem:[#allocation7 + $0x2d0] sm:$0xff]  ;;  %v137_v40 = vld [vmem:[#allocation7 + $0xb8] sm:$0xff] }
  0x63   :  { %353 = vmatpush.msrb.mxu1 %v236_v7  ;;  %393 = vmatpush.msrb.mxu3 %v237_v9  ;;  %v205_v41 = vld [vmem:[#allocation7 + $0x2d8] sm:$0xff]  ;;  %v132_v42 = vld [vmem:[#allocation7 + $0x90] sm:$0xff] }
  0x64   :  { %334 = vmatpush.msrb.mxu0 %v168_v6  ;;  %374 = vmatpush.msrb.mxu2 %v169_v8  ;;  %v200_v43 = vld [vmem:[#allocation7 + $0x2b0] sm:$0xff]  ;;  %v133_v44 = vld [vmem:[#allocation7 + $0x98] sm:$0xff] }
  0x65   :  { %354 = vmatpush.msrb.mxu1 %v232_v11  ;;  %394 = vmatpush.msrb.mxu3 %v233_v13  ;;  %v201_v45 = vld [vmem:[#allocation7 + $0x2b8] sm:$0xff]  ;;  %v112_v46 = vld [vmem:[#allocation4] sm:$0xff] }
  0x66   :  { %335 = vmatpush.msrb.mxu0 %v164_v10  ;;  %375 = vmatpush.msrb.mxu2 %v165_v12  ;;  %v128_v47 = vld [vmem:[#allocation7 + $0x70] sm:$0xff]  ;;  %v129_v49 = vld [vmem:[#allocation7 + $0x78] sm:$0xff] }
  0x67   :  { %355 = vmatpush.msrb.mxu1 %v228_v15  ;;  %395 = vmatpush.msrb.mxu3 %v229_v17  ;;  %v196_v48 = vld [vmem:[#allocation7 + $0x290] sm:$0xff]  ;;  %v197_v50 = vld [vmem:[#allocation7 + $0x298] sm:$0xff]  ;;  %v444_v15 = vld [vmem:[#allocation10 + $0xe0] sm:$0xff] }
  0x68   :  { %336 = vmatpush.msrb.mxu0 %v160_v14  ;;  %376 = vmatpush.msrb.mxu2 %v161_v16  ;;  %v113_v51 = vld [vmem:[#allocation4 + $0x8] sm:$0xff]  ;;  %v124_v52 = vld [vmem:[#allocation7 + $0x50] sm:$0xff]  ;;  %v428_v14 = vld [vmem:[#allocation10 + $0x60] sm:$0xff] }
  0x69   :  { %356 = vmatpush.msrb.mxu1 %v224_v19  ;;  %396 = vmatpush.msrb.mxu3 %v225_v21  ;;  %v192_v53 = vld [vmem:[#allocation7 + $0x270] sm:$0xff]  ;;  %v125_v54 = vld [vmem:[#allocation7 + $0x58] sm:$0xff]  ;;  %v460_v16 = vld [vmem:[#allocation10 + $0x160] sm:$0xff] }
  0x6a   :  { %337 = vmatpush.msrb.mxu0 %v156_v18  ;;  %377 = vmatpush.msrb.mxu2 %v157_v20  ;;  %v193_v55 = vld [vmem:[#allocation7 + $0x278] sm:$0xff]  ;;  %v120_v56 = vld [vmem:[#allocation7 + $0x30] sm:$0xff] }
  0x6b   :  { %357 = vmatpush.msrb.mxu1 %v220_v23  ;;  %397 = vmatpush.msrb.mxu3 %v221_v25  ;;  %v188_v57 = vld [vmem:[#allocation7 + $0x250] sm:$0xff]  ;;  %v121_v58 = vld [vmem:[#allocation7 + $0x38] sm:$0xff]  ;;  %v424_v25 = vld [vmem:[#allocation10 + $0x40] sm:$0xff] }
  0x6c   :  { %338 = vmatpush.msrb.mxu0 %v152_v22  ;;  %378 = vmatpush.msrb.mxu2 %v153_v24  ;;  %v189_v59 = vld [vmem:[#allocation7 + $0x258] sm:$0xff]  ;;  %v116_v60 = vld [vmem:[#allocation7 + $0x10] sm:$0xff] }
  0x6d   :  { %358 = vmatpush.msrb.mxu1 %v216_v27  ;;  %398 = vmatpush.msrb.mxu3 %v217_v29  ;;  %v184_v61 = vld [vmem:[#allocation7 + $0x230] sm:$0xff]  ;;  %v117_v62 = vld [vmem:[#allocation7 + $0x18] sm:$0xff]  ;;  %v440_v27 = vld [vmem:[#allocation10 + $0xc0] sm:$0xff] }
  0x6e   :  { %339 = vmatpush.msrb.mxu0 %v148_v26  ;;  %379 = vmatpush.msrb.mxu2 %v149_v28  ;;  %v185_v63 = vld [vmem:[#allocation7 + $0x238] sm:$0xff]  ;;  %v180_v0 = vld [vmem:[#allocation7 + $0x210] sm:$0xff]  ;;  %v476_v29 = vld [vmem:[#allocation10 + $0x1e0] sm:$0xff] }
  0x6f   :  { %359 = vmatpush.msrb.mxu1 %v212_v31  ;;  %399 = vmatpush.msrb.mxu3 %v213_v33  ;;  %v181_v1 = vld [vmem:[#allocation7 + $0x218] sm:$0xff]  ;;  %v429_v10 = vld [vmem:[#allocation10 + $0x68] sm:$0xff] }
  0x70   :  { %340 = vmatpush.msrb.mxu0 %v144_v30  ;;  %380 = vmatpush.msrb.mxu2 %v145_v32  ;;  %v431_v2 = vld [vmem:[#allocation10 + $0x78] sm:$0xff]  ;;  %v430_v6 = vld [vmem:[#allocation10 + $0x70] sm:$0xff]  ;;  %v445_v11 = vld [vmem:[#allocation10 + $0xe8] sm:$0xff] }
  0x71   :  { %360 = vmatpush.msrb.mxu1 %v208_v35  ;;  %400 = vmatpush.msrb.mxu3 %v209_v37  ;;  %v447_v3 = vld [vmem:[#allocation10 + $0xf8] sm:$0xff]  ;;  %v446_v7 = vld [vmem:[#allocation10 + $0xf0] sm:$0xff]  ;;  %v461_v12 = vld [vmem:[#allocation10 + $0x168] sm:$0xff] }
  0x72   :  { %341 = vmatpush.msrb.mxu0 %v140_v34  ;;  %381 = vmatpush.msrb.mxu2 %v141_v36  ;;  %v463_v4 = vld [vmem:[#allocation10 + $0x178] sm:$0xff]  ;;  %v462_v8 = vld [vmem:[#allocation10 + $0x170] sm:$0xff]  ;;  %v477_v13 = vld [vmem:[#allocation10 + $0x1e8] sm:$0xff] }
  0x73   :  { %361 = vmatpush.msrb.mxu1 %v204_v39  ;;  %401 = vmatpush.msrb.mxu3 %v205_v41  ;;  %v479_v5 = vld [vmem:[#allocation10 + $0x1f8] sm:$0xff]  ;;  %v478_v9 = vld [vmem:[#allocation10 + $0x1f0] sm:$0xff]  ;;  %v425_v23 = vld [vmem:[#allocation10 + $0x48] sm:$0xff] }
  0x74   :  { %342 = vmatpush.msrb.mxu0 %v136_v38  ;;  %382 = vmatpush.msrb.mxu2 %v137_v40  ;;  %v427_v17 = vld [vmem:[#allocation10 + $0x58] sm:$0xff]  ;;  %v426_v20 = vld [vmem:[#allocation10 + $0x50] sm:$0xff]  ;;  %v441_v24 = vld [vmem:[#allocation10 + $0xc8] sm:$0xff] }
  0x75   :  { %362 = vmatpush.msrb.mxu1 %v200_v43  ;;  %402 = vmatpush.msrb.mxu3 %v201_v45  ;;  %v443_v18 = vld [vmem:[#allocation10 + $0xd8] sm:$0xff]  ;;  %v442_v21 = vld [vmem:[#allocation10 + $0xd0] sm:$0xff]  ;;  %v457_v28 = vld [vmem:[#allocation10 + $0x148] sm:$0xff] }
  0x76   :  { %343 = vmatpush.msrb.mxu0 %v132_v42  ;;  %383 = vmatpush.msrb.mxu2 %v133_v44  ;;  %v459_v19 = vld [vmem:[#allocation10 + $0x158] sm:$0xff]  ;;  %v458_v22 = vld [vmem:[#allocation10 + $0x150] sm:$0xff]  ;;  %v456_v32 = vld [vmem:[#allocation10 + $0x140] sm:$0xff] }
  0x77   :  { %268 = vmatmul.f32.vlgmr.msra.gmra.mxu0 %v112_v46  ;;  %308 = vmatmul.f32.vlgmr.msra.gmra.mxu2 %v112_v46  ;;  %v423_v26 = vld [vmem:[#allocation10 + $0x38] sm:$0xff]  ;;  %v422_v30 = vld [vmem:[#allocation10 + $0x30] sm:$0xff]  ;;  %v421_v34 = vld [vmem:[#allocation10 + $0x28] sm:$0xff] }
  0x78   :  { %344 = vmatpush.msrb.mxu0 %v128_v47  ;;  %363 = vmatpush.msrb.mxu1 %v196_v48  ;;  %v439_v31 = vld [vmem:[#allocation10 + $0xb8] sm:$0xff]  ;;  %v438_v35 = vld [vmem:[#allocation10 + $0xb0] sm:$0xff]  ;;  %v420_v38 = vld [vmem:[#allocation10 + $0x20] sm:$0xff] }
  0x79   :  { %384 = vmatpush.msrb.mxu2 %v129_v49  ;;  %403 = vmatpush.msrb.mxu3 %v197_v50  ;;  %v475_v33 = vld [vmem:[#allocation10 + $0x1d8] sm:$0xff]  ;;  %v474_v37 = vld [vmem:[#allocation10 + $0x1d0] sm:$0xff]  ;;  %v437_v39 = vld [vmem:[#allocation10 + $0xa8] sm:$0xff] }
  0x7a   :  { %288 = vmatmul.f32.vlgmr.msra.gmra.mxu1 %v113_v51  ;;  %328 = vmatmul.f32.vlgmr.msra.gmra.mxu3 %v113_v51  ;;  %v455_v36 = vld [vmem:[#allocation10 + $0x138] sm:$0xff]  ;;  %v454_v40 = vld [vmem:[#allocation10 + $0x130] sm:$0xff]  ;;  %v473_v41 = vld [vmem:[#allocation10 + $0x1c8] sm:$0xff] }
  0x7b   :  { %345 = vmatpush.msrb.mxu0 %v124_v52  ;;  %364 = vmatpush.msrb.mxu1 %v192_v53  ;;  %v419_v42 = vld [vmem:[#allocation10 + $0x18] sm:$0xff]  ;;  %v436_v43 = vld [vmem:[#allocation10 + $0xa0] sm:$0xff]  ;;  %v453_v44 = vld [vmem:[#allocation10 + $0x128] sm:$0xff] }
  0x7c   :  { %385 = vmatpush.msrb.mxu2 %v125_v54  ;;  %404 = vmatpush.msrb.mxu3 %v193_v55  ;;  %v472_v45 = vld [vmem:[#allocation10 + $0x1c0] sm:$0xff]  ;;  %v435_v47 = vld [vmem:[#allocation10 + $0x98] sm:$0xff]  ;;  %v417_v50 = vld [vmem:[#allocation10 + $0x8] sm:$0xff] }
  0x7d   :  { %346 = vmatpush.msrb.mxu0 %v120_v56  ;;  %365 = vmatpush.msrb.mxu1 %v188_v57  ;;  %v452_v48 = vld [vmem:[#allocation10 + $0x120] sm:$0xff]  ;;  %v471_v49 = vld [vmem:[#allocation10 + $0x1b8] sm:$0xff]  ;;  %v470_v53 = vld [vmem:[#allocation10 + $0x1b0] sm:$0xff] }
  0x7e   :  { %386 = vmatpush.msrb.mxu2 %v121_v58  ;;  %405 = vmatpush.msrb.mxu3 %v189_v59  ;;  %v451_v52 = vld [vmem:[#allocation10 + $0x118] sm:$0xff]  ;;  %v416_v54 = vld [vmem:[#allocation10] sm:$0xff]  ;;  %v433_v55 = vld [vmem:[#allocation10 + $0x88] sm:$0xff] }
  0x7f   :  { %347 = vmatpush.msrb.mxu0 %v116_v60  ;;  %366 = vmatpush.msrb.mxu1 %v184_v61  ;;  %v450_v56 = vld [vmem:[#allocation10 + $0x110] sm:$0xff]  ;;  %v469_v57 = vld [vmem:[#allocation10 + $0x1a8] sm:$0xff]  ;;  %v432_v58 = vld [vmem:[#allocation10 + $0x80] sm:$0xff] }
  0x80   :  { %387 = vmatpush.msrb.mxu2 %v117_v62  ;;  %406 = vmatpush.msrb.mxu3 %v185_v63  ;;  %v449_v59 = vld [vmem:[#allocation10 + $0x108] sm:$0xff]  ;;  %v468_v60 = vld [vmem:[#allocation10 + $0x1a0] sm:$0xff]  ;;  %v467_v62 = vld [vmem:[#allocation10 + $0x198] sm:$0xff] }
  0x81   :  { %348 = vmatmul.f32.vlgmr.msrb.gmra.mxu0 %v112_v46  ;;  %388 = vmatmul.f32.vlgmr.msrb.gmra.mxu2 %v112_v46  ;;  %v418_v46 = vld [vmem:[#allocation10 + $0x10] sm:$0xff]  ;;  %v448_v61 = vld [vmem:[#allocation10 + $0x100] sm:$0xff] }
  0x82   :  { %367 = vmatpush.msrb.mxu1 %v180_v0  ;;  %407 = vmatpush.msrb.mxu3 %v181_v1  ;;  %v466_v63 = vld [vmem:[#allocation10 + $0x190] sm:$0xff]  ;;  %v465_v0 = vld [vmem:[#allocation10 + $0x188] sm:$0xff]  ;;  %v464_v1 = vld [vmem:[#allocation10 + $0x180] sm:$0xff] }
  0x83   :  { %368 = vmatmul.f32.vlgmr.msrb.gmra.mxu1 %v113_v51  ;;  %408 = vmatmul.f32.vlgmr.msrb.gmra.mxu3 %v113_v51  ;;  %v434_v51 = vld [vmem:[#allocation10 + $0x90] sm:$0xff] }
  0x84   :  { %484 = vmatpush.msra.mxu0 %v431_v2  ;;  %504 = vmatpush.msra.mxu1 %v447_v3  ;;  %v242_v2 = vld [vmem:[#allocation9] sm:$0xf] }
  0x85   :  { %524 = vmatpush.msra.mxu2 %v463_v4  ;;  %544 = vmatpush.msra.mxu3 %v479_v5  ;;  %v244_v3 = vperm.slane %v242_v2, 0 }
  0x86   :  { %485 = vmatpush.msra.mxu0 %v430_v6  ;;  %505 = vmatpush.msra.mxu1 %v446_v7  ;;  %v245_v7 = vperm.slane %v242_v2, 1 }
  0x87   :  { %525 = vmatpush.msra.mxu2 %v462_v8  ;;  %545 = vmatpush.msra.mxu3 %v478_v9 }
  0x88   :  { %486 = vmatpush.msra.mxu0 %v429_v10  ;;  %506 = vmatpush.msra.mxu1 %v445_v11  ;;  %v246_v11 = vperm.slane %v242_v2, 2 }
  0x89   :  { %526 = vmatpush.msra.mxu2 %v461_v12  ;;  %546 = vmatpush.msra.mxu3 %v477_v13 }
  0x8a   :  { %487 = vmatpush.msra.mxu0 %v428_v14  ;;  %507 = vmatpush.msra.mxu1 %v444_v15 }
  0x8b   :  { %527 = vmatpush.msra.mxu2 %v460_v16  ;;  %547 = vmatpush.msra.mxu3 %v476_v29 }
  0x8c   :  { %488 = vmatpush.msra.mxu0 %v427_v17  ;;  %508 = vmatpush.msra.mxu1 %v443_v18 }
  0x8d   :  { %528 = vmatpush.msra.mxu2 %v459_v19  ;;  %548 = vmatpush.msra.mxu3 %v475_v33  ;;  %v247_v19 = vperm.slane %v242_v2, 3 }
  0x8e   :  { %489 = vmatpush.msra.mxu0 %v426_v20  ;;  %509 = vmatpush.msra.mxu1 %v442_v21 }
  0x8f   :  { %529 = vmatpush.msra.mxu2 %v458_v22  ;;  %549 = vmatpush.msra.mxu3 %v474_v37 }
  0x90   :  { %490 = vmatpush.msra.mxu0 %v425_v23  ;;  %510 = vmatpush.msra.mxu1 %v441_v24 }
  0x91   :  { %530 = vmatpush.msra.mxu2 %v457_v28  ;;  %550 = vmatpush.msra.mxu3 %v473_v41 }
  0x92   :  { %491 = vmatpush.msra.mxu0 %v424_v25  ;;  %511 = vmatpush.msra.mxu1 %v440_v27  ;;  %v608_v27 = vld [vmem:[#allocation12] ss:$0 sm:$0xff] }
  0x93   :  { %531 = vmatpush.msra.mxu2 %v456_v32  ;;  %551 = vmatpush.msra.mxu3 %v472_v45 }
  0x94   :  { %492 = vmatpush.msra.mxu0 %v423_v26  ;;  %512 = vmatpush.msra.mxu1 %v439_v31 }
  0x95   :  { %532 = vmatpush.msra.mxu2 %v455_v36  ;;  %552 = vmatpush.msra.mxu3 %v471_v49 }
  0x96   :  { %493 = vmatpush.msra.mxu0 %v422_v30  ;;  %513 = vmatpush.msra.mxu1 %v438_v35 }
  0x97   :  { %533 = vmatpush.msra.mxu2 %v454_v40  ;;  %553 = vmatpush.msra.mxu3 %v470_v53 }
  0x98   :  { %494 = vmatpush.msra.mxu0 %v421_v34  ;;  %514 = vmatpush.msra.mxu1 %v437_v39 }
  0x99   :  { %534 = vmatpush.msra.mxu2 %v453_v44  ;;  %554 = vmatpush.msra.mxu3 %v469_v57 }
  0x9a   :  { %495 = vmatpush.msra.mxu0 %v420_v38  ;;  %515 = vmatpush.msra.mxu1 %v436_v43 }
  0x9b   :  { %535 = vmatpush.msra.mxu2 %v452_v48  ;;  %555 = vmatpush.msra.mxu3 %v468_v60 }
  0x9c   :  { %496 = vmatpush.msra.mxu0 %v419_v42  ;;  %516 = vmatpush.msra.mxu1 %v435_v47 }
  0x9d   :  { %536 = vmatpush.msra.mxu2 %v451_v52  ;;  %556 = vmatpush.msra.mxu3 %v467_v62 }
  0x9e   :  { %497 = vmatpush.msra.mxu0 %v418_v46  ;;  %517 = vmatpush.msra.mxu1 %v434_v51 }
  0x9f   :  { %537 = vmatpush.msra.mxu2 %v450_v56  ;;  %557 = vmatpush.msra.mxu3 %v466_v63 }
  0xa0   :  { %498 = vmatpush.msra.mxu0 %v417_v50  ;;  %518 = vmatpush.msra.mxu1 %v433_v55 }
  0xa1   :  { %538 = vmatpush.msra.mxu2 %v449_v59  ;;  %558 = vmatpush.msra.mxu3 %v465_v0 }
  0xa2   :  { %499 = vmatpush.msra.mxu0 %v416_v54  ;;  %519 = vmatpush.msra.mxu1 %v432_v58 }
  0xa3   :  { %539 = vmatpush.msra.mxu2 %v448_v61  ;;  %559 = vmatpush.msra.mxu3 %v464_v1 }
  0xf4   :  { %v269_v4 = vpop.f32.mrf.mxu0 }
  0xf5   :  { %v270_v5 = vadd.f32 %v269_v4, %v244_v3 }
  0xf7   :  { %v289_v6 = vpop.f32.mrf.mxu1 }
  0xf8   :  { %v290_v8 = vadd.f32 %v289_v6, %v270_v5 }
  0xfa   :  { %609 = vtanh.f32 %v290_v8  ;;  %v309_v9 = vpop.f32.mrf.mxu2 }
  0xfb   :  { %v310_v10 = vadd.f32 %v309_v9, %v245_v7 }
  0xfd   :  { %v329_v12 = vpop.f32.mrf.mxu3 }
  0xfe   :  { %v330_v13 = vadd.f32 %v329_v12, %v310_v10  ;;  %v349_v14 = vpop.f32.mrf.mxu0 }
  0xff   :  { %v350_v15 = vadd.f32 %v349_v14, %v246_v11 }
 0x100   :  { %v610_v16 = vpop.eup %609  ;;  %611 = vtanh.f32 %v330_v13  ;;  %v369_v17 = vpop.f32.mrf.mxu1 }
 0x101   :  { %v370_v18 = vadd.f32 %v369_v17, %v350_v15  ;;  %500 = vmatmul.f32.vlgmr.msra.gmra.mxu0 %v610_v16 }
 0x103   :  { %613 = vtanh.f32 %v370_v18 }
 0x104   :  { %v389_v20 = vpop.f32.mrf.mxu2 }
 0x105   :  { %v390_v21 = vadd.f32 %v389_v20, %v247_v19 }
 0x106   :  { %v612_v22 = vpop.eup %611  ;;  %v409_v23 = vpop.f32.mrf.mxu3 }
 0x107   :  { %v410_v24 = vadd.f32 %v409_v23, %v390_v21  ;;  %520 = vmatmul.f32.vlgmr.msra.gmra.mxu1 %v612_v22 }
 0x109   :  { %v614_v25 = vpop.eup %613  ;;  %615 = vtanh.f32 %v410_v24 }
 0x10a   :  { %540 = vmatmul.f32.vlgmr.msra.gmra.mxu2 %v614_v25 }
 0x10f   :  { %v616_v26 = vpop.eup %615 }
 0x110   :  { %560 = vmatmul.f32.vlgmr.msra.gmra.mxu3 %v616_v26 }
 0x17e   :  { %v501_v28 = vpop.f32.mrf.mxu0 }
 0x17f   :  { %v502_v29 = vadd.f32 %v608_v27, %v501_v28 }
 0x184   :  { %v521_v30 = vpop.f32.mrf.mxu1 }
 0x185   :  { %v522_v32 = vadd.f32 %v521_v30, %v502_v29 }
 0x18d   :  { %v541_v31 = vpop.f32.mrf.mxu2 }
 0x18e   :  { %v542_v33 = vadd.f32 %v541_v31, %v522_v32 }
 0x193   :  { %v561_v34 = vpop.f32.mrf.mxu3 }
 0x194   :  { %v562_v35 = vadd.f32 %v561_v34, %v542_v33 }
 0x196   :  { %564 = vst [vmem:[#allocation13] sm:$0xff] %v562_v35 }
 0x197   :  { %575 = dma.vmem_to_hbm [thread:$0]  %s571_s5, 128, %s573_s17, [#allocation6]  }
 0x198   :  { %767 = dma.done.wait [#allocation6], 128  }
 0x199   :  { %768 = vsyncadd [#allocation6], 4294967168 }
 0x19a   :  { %580 = vsyncpa [#allocation5], 1 }
 0x19b   :  { %581 = vsyncpa [#allocation8], 1 }
 0x19c   :  { %582 = vsyncpa [#allocation11], 1 }
 0x19d   :  { %583 = vsyncpa [#allocation6], 1 }

</bundles_post_ra>
